<compile_context>
chip_gen: v7x
topology: tpu7x:2x2x1
jax: 0.10.0
libtpu: 0.0.40
codegen_flags: <defaults>
</compile_context>

<pallas_src>
import functools

import jax
import jax.numpy as jnp
from jax.experimental import pallas as pl
from jax.experimental.pallas import tpu as pltpu


def simple_nn_kernel(x_ref, w1_ref, w2_ref, small_ref, o_ref, *, d1, d2):
    # One grid step = one batch tile. w1/w2/small have constant index_maps so they
    # stay resident in VMEM; x / o are pipelined (double-buffered) by the BlockSpecs.
    w_dtype = w1_ref.dtype
    x = x_ref[...].astype(w_dtype)              # (tm, F); cast in-kernel, not in the wrapper

    small = small_ref[...]                      # (4, 128) f32: rows = [b1 | b2 | w3 | b3]
    b1 = small[0:1, :d1]                        # (1, d1)
    b2 = small[1:2, :d2]                        # (1, d2)
    w3 = small[2:3, :d2]                        # (1, d2)  -- fc3 weight as a row
    b3 = small[3:4, 0:1]                        # (1, 1)

    # fc1 + ReLU  (MXU, f32 accumulate)
    h1 = jnp.dot(x, w1_ref[...], preferred_element_type=jnp.float32) + b1
    h1 = jnp.maximum(h1, 0.0)

    # fc2 + ReLU  (MXU, f32 accumulate)
    h2 = jnp.dot(h1.astype(w_dtype), w2_ref[...], preferred_element_type=jnp.float32) + b2
    h2 = jnp.maximum(h2, 0.0)                   # (tm, d2) f32

    # fc3 (N=1) + sigmoid, computed against h2^T so the result is a lane-dense (1, tm)
    # row (dense stores, dense epilogue vregs) instead of a (tm, 1) column that would
    # need 1/128-lane masked stores.  The transpose rides the otherwise-idle XLU.
    h2t = h2.T                                  # (d2, tm)
    h3 = jnp.dot(w3, h2t, preferred_element_type=jnp.float32) + b3   # (1, tm)
    o_ref[0] = jax.nn.sigmoid(h3).astype(o_ref.dtype)


def _choose_tile(batch, tm_max):
    """Pick (tile_rows, num_tiles).

    - tile_rows is a multiple of 8 (f32 sublane quantum) and capped by tm_max,
    - padding is bounded to <8 rows per tile (never a near-full wasted tile),
    - batches with >=1024 rows get at least 2 tiles so v7x (2 TensorCores) can shard
      the "parallel" grid axis; tiny batches keep a single small tile.
    """
    tm_max = max(8, (int(tm_max) // 8) * 8)
    rounded = ((batch + 7) // 8) * 8
    if rounded <= tm_max:
        n_tiles = 2 if rounded >= 1024 else 1
    else:
        n_tiles = pl.cdiv(rounded, tm_max)
    tm = ((pl.cdiv(rounded, n_tiles) + 7) // 8) * 8
    n_tiles = pl.cdiv(batch, tm)
    return tm, n_tiles


def simple_nn_forward(x, params, *, tm_max=2048, compute_dtype=jnp.float32):
    """Forward pass matching SimpleNN. tm_max caps rows per grid step.

    tm_max=2048 keeps the double-buffered, lane-padded f32 x tile plus intermediates
    well under v5e's 16 MiB default scoped VMEM; it is equally safe on v6e/v7x.
    """
    w1, b1, w2, b2, w3, b3 = params
    batch, in_features = x.shape
    d1 = w1.shape[1]
    d2 = w2.shape[1]
    assert d1 <= 128 and d2 <= 128, "packed-bias layout assumes hidden dims <= 128"

    tm, n_tiles = _choose_tile(batch, tm_max)

    # Weights are tiny and resident: casting them in the wrapper is negligible.
    w1c = w1.astype(compute_dtype)
    w2c = w2.astype(compute_dtype)

    # Pack b1, b2, w3, b3 into a single small resident f32 array (one DMA / one VMEM
    # tile instead of four).
    small = jnp.zeros((4, 128), jnp.float32)
    small = small.at[0, :d1].set(b1.reshape(-1).astype(jnp.float32))
    small = small.at[1, :d2].set(b2.reshape(-1).astype(jnp.float32))
    small = small.at[2, :d2].set(w3.reshape(-1).astype(jnp.float32))
    small = small.at[3, 0].set(b3.reshape(-1)[0].astype(jnp.float32))

    rows = n_tiles * tm
    wbytes = jnp.dtype(compute_dtype).itemsize
    flops = 2 * rows * (in_features * d1 + d1 * d2 + d2)
    bytes_accessed = (
        batch * in_features * x.dtype.itemsize      # x streamed once, in its own dtype
        + rows * 4                                  # lane-dense f32 output
        + (in_features * d1 + d1 * d2) * wbytes     # resident w1, w2
        + 4 * 128 * 4                               # packed biases + fc3 weight
    )

    kernel = functools.partial(simple_nn_kernel, d1=d1, d2=d2)

    out = pl.pallas_call(
        kernel,
        out_shape=jax.ShapeDtypeStruct((n_tiles, 1, tm), jnp.float32),
        grid=(n_tiles,),
        in_specs=[
            # x is batch-tiled; the last (possibly ragged) tile is handled by Pallas —
            # garbage tail rows are row-independent and sliced off below.
            pl.BlockSpec((tm, in_features), lambda i: (i, 0)),
            pl.BlockSpec(w1c.shape, lambda i: (0, 0)),     # resident
            pl.BlockSpec(w2c.shape, lambda i: (0, 0)),     # resident
            pl.BlockSpec(small.shape, lambda i: (0, 0)),   # resident
        ],
        # Lane-dense output: one (1, tm) row per tile.
        out_specs=pl.BlockSpec((1, 1, tm), lambda i: (i, 0, 0)),
        compiler_params=pltpu.CompilerParams(
            dimension_semantics=("parallel",),             # v7x: shard tiles over 2 TCs
            vmem_limit_bytes=32 * 1024 * 1024,
        ),
        cost_estimate=pl.CostEstimate(
            flops=flops,
            transcendentals=rows,                          # one sigmoid per row
            bytes_accessed=bytes_accessed,
        ),
    )(x, w1c, w2c, small)

    return out.reshape(n_tiles * tm)[:batch].reshape(batch, 1)


def init_params(key):
    # Deterministic init mimicking PyTorch nn.Linear default:
    # U(-1/sqrt(fan_in), 1/sqrt(fan_in)) for both weight and bias.
    dims = [(20, 64), (64, 32), (32, 1)]
    params = []
    for (fan_in, fan_out) in dims:
        key, kw, kb = jax.random.split(key, 3)
        bound = 1.0 / jnp.sqrt(jnp.float32(fan_in))
        w = jax.random.uniform(kw, (fan_in, fan_out), jnp.float32, -bound, bound)
        b = jax.random.uniform(kb, (1, fan_out), jnp.float32, -bound, bound)
        params.extend([w, b])
    return tuple(params)


def reference_forward(x, params):
    w1, b1, w2, b2, w3, b3 = params
    h1 = jnp.maximum(x @ w1 + b1, 0.0)
    h2 = jnp.maximum(h1 @ w2 + b2, 0.0)
    return jax.nn.sigmoid(h2 @ w3 + b3)


if __name__ == "__main__":
    key = jax.random.PRNGKey(0)
    key, kx = jax.random.split(key)
    params = init_params(key)

    # batch=8: single tiny tile; batch=300: single ragged tile (padding <8 rows);
    # batch=2500: two tiles (exercises the multi-tile / v7x path).
    for batch in (8, 300, 2500):
        x = jax.random.normal(jax.random.fold_in(kx, batch), (batch, 20), jnp.float32)
        ref = reference_forward(x, params)

        # f32 path: tight match against the pure-f32 reference.
        out_f32 = jax.block_until_ready(
            simple_nn_forward(x, params, compute_dtype=jnp.float32))
        assert out_f32.shape == (batch, 1), out_f32.shape
        assert jnp.allclose(out_f32, ref, atol=1e-4, rtol=1e-4)

        # bf16 weights + in-kernel bf16 cast of x, f32 accumulation.
        out_bf16 = jax.block_until_ready(
            simple_nn_forward(x, params, compute_dtype=jnp.bfloat16))
        assert out_bf16.shape == (batch, 1), out_bf16.shape
        assert jnp.allclose(out_bf16, ref, atol=2e-2, rtol=2e-2)

    print("KERNEL_OK")
</pallas_src>

<mosaic_0001>
module attributes {stable_mosaic.version = 11 : i64} {
  func.func @simple_nn_kernel(%arg0: i32, %arg1: memref<8x20xf32, #tpu.memory_space<vmem>>, %arg2: memref<20x64xf32, #tpu.memory_space<vmem>>, %arg3: memref<64x32xf32, #tpu.memory_space<vmem>>, %arg4: memref<4x128xf32, #tpu.memory_space<vmem>>, %arg5: memref<1x1x8xf32, #tpu.memory_space<vmem>>) attributes {dimension_semantics = [#tpu.dimension_semantics<parallel>], iteration_bounds = array<i64: 1>, scalar_prefetch = 0 : i64, scratch_operands = 0 : i64, tpu.core_type = #tpu.core_type<tc>, window_params = [{transform_indices = @transform_0, window_bounds = array<i64: 8, 20>}, {pipeline_mode = #tpu.pipeline_mode<synchronous>, transform_indices = @transform_1, window_bounds = array<i64: 20, 64>}, {pipeline_mode = #tpu.pipeline_mode<synchronous>, transform_indices = @transform_2, window_bounds = array<i64: 64, 32>}, {pipeline_mode = #tpu.pipeline_mode<synchronous>, transform_indices = @transform_3, window_bounds = array<i64: 4, 128>}, {transform_indices = @transform_4, window_bounds = array<i64: 1, 1, 8>}]} {
    %c0 = arith.constant 0 : index
    %c0_0 = arith.constant 0 : index
    %0 = vector.load %arg1[%c0, %c0_0] : memref<8x20xf32, #tpu.memory_space<vmem>>, vector<8x20xf32>
    %c0_1 = arith.constant 0 : index
    %c0_2 = arith.constant 0 : index
    %1 = vector.load %arg4[%c0_1, %c0_2] : memref<4x128xf32, #tpu.memory_space<vmem>>, vector<4x128xf32>
    %2 = vector.extract_strided_slice %1 {offsets = [0, 0], sizes = [1, 64], strides = [1, 1]} : vector<4x128xf32> to vector<1x64xf32>
    %3 = vector.extract_strided_slice %1 {offsets = [1, 0], sizes = [1, 32], strides = [1, 1]} : vector<4x128xf32> to vector<1x32xf32>
    %4 = vector.extract_strided_slice %1 {offsets = [2, 0], sizes = [1, 32], strides = [1, 1]} : vector<4x128xf32> to vector<1x32xf32>
    %5 = vector.extract_strided_slice %1 {offsets = [3, 0], sizes = [1, 1], strides = [1, 1]} : vector<4x128xf32> to vector<1x1xf32>
    %c0_3 = arith.constant 0 : index
    %c0_4 = arith.constant 0 : index
    %6 = vector.load %arg2[%c0_3, %c0_4] : memref<20x64xf32, #tpu.memory_space<vmem>>, vector<20x64xf32>
    %cst = arith.constant dense<0.000000e+00> : vector<8x64xf32>
    %7 = tpu.matmul %0, %6, %cst {dimension_numbers = #tpu.dot_dimension_numbers<[1], [0], [0], [1], [0, 0, 1, 1], [], []>} : vector<8x20xf32>, vector<20x64xf32>, vector<8x64xf32> -> vector<8x64xf32>
    %8 = vector.broadcast %2 : vector<1x64xf32> to vector<8x64xf32>
    %9 = arith.addf %7, %8 : vector<8x64xf32>
    %cst_5 = arith.constant 0.000000e+00 : f32
    %10 = vector.broadcast %cst_5 : f32 to vector<8x64xf32>
    %11 = arith.maximumf %9, %10 : vector<8x64xf32>
    %c0_6 = arith.constant 0 : index
    %c0_7 = arith.constant 0 : index
    %12 = vector.load %arg3[%c0_6, %c0_7] : memref<64x32xf32, #tpu.memory_space<vmem>>, vector<64x32xf32>
    %cst_8 = arith.constant dense<0.000000e+00> : vector<8x32xf32>
    %13 = tpu.matmul %11, %12, %cst_8 {dimension_numbers = #tpu.dot_dimension_numbers<[1], [0], [0], [1], [0, 0, 1, 1], [], []>} : vector<8x64xf32>, vector<64x32xf32>, vector<8x32xf32> -> vector<8x32xf32>
    %14 = vector.broadcast %3 : vector<1x32xf32> to vector<8x32xf32>
    %15 = arith.addf %13, %14 : vector<8x32xf32>
    %cst_9 = arith.constant 0.000000e+00 : f32
    %16 = vector.broadcast %cst_9 : f32 to vector<8x32xf32>
    %17 = arith.maximumf %15, %16 : vector<8x32xf32>
    %18 = tpu.transpose %17, [1, 0] : vector<8x32xf32> -> vector<32x8xf32>
    %cst_10 = arith.constant dense<0.000000e+00> : vector<1x8xf32>
    %19 = tpu.matmul %4, %18, %cst_10 {dimension_numbers = #tpu.dot_dimension_numbers<[1], [0], [0], [1], [0, 0, 1, 1], [], []>} : vector<1x32xf32>, vector<32x8xf32>, vector<1x8xf32> -> vector<1x8xf32>
    %20 = vector.broadcast %5 : vector<1x1xf32> to vector<1x8xf32>
    %21 = arith.addf %19, %20 : vector<1x8xf32>
    %22 = arith.negf %21 : vector<1x8xf32>
    %23 = math.exp %22 : vector<1x8xf32>
    %cst_11 = arith.constant 1.000000e+00 : f32
    %24 = vector.broadcast %cst_11 : f32 to vector<1x8xf32>
    %25 = arith.addf %24, %23 : vector<1x8xf32>
    %26 = arith.divf %24, %25 : vector<1x8xf32>
    %c0_12 = arith.constant 0 : index
    %c0_13 = arith.constant 0 : index
    %c0_14 = arith.constant 0 : index
    %27 = vector.load %arg5[%c0_12, %c0_13, %c0_14] : memref<1x1x8xf32, #tpu.memory_space<vmem>>, vector<1x1x8xf32>
    %28 = vector.shape_cast %27 : vector<1x1x8xf32> to vector<1x8xf32>
    %29 = vector.shape_cast %26 : vector<1x8xf32> to vector<1x1x8xf32>
    tpu.vector_store %arg5[%c0_12, %c0_13, %c0_14], %29 {strides = array<i32>} : memref<1x1x8xf32, #tpu.memory_space<vmem>>, vector<1x1x8xf32>,
    return
  }
  func.func @transform_0(%arg0: i32) -> (i32, i32) {
    %c0_i32 = arith.constant 0 : i32
    %c0_i32_0 = arith.constant 0 : i32
    return %arg0, %c0_i32 : i32, i32
  }
  func.func @transform_1(%arg0: i32) -> (i32, i32) {
    %c0_i32 = arith.constant 0 : i32
    %c0_i32_0 = arith.constant 0 : i32
    %c0_i32_1 = arith.constant 0 : i32
    return %c0_i32, %c0_i32_0 : i32, i32
  }
  func.func @transform_2(%arg0: i32) -> (i32, i32) {
    %c0_i32 = arith.constant 0 : i32
    %c0_i32_0 = arith.constant 0 : i32
    %c0_i32_1 = arith.constant 0 : i32
    return %c0_i32, %c0_i32_0 : i32, i32
  }
  func.func @transform_3(%arg0: i32) -> (i32, i32) {
    %c0_i32 = arith.constant 0 : i32
    %c0_i32_0 = arith.constant 0 : i32
    %c0_i32_1 = arith.constant 0 : i32
    return %c0_i32, %c0_i32_0 : i32, i32
  }
  func.func @transform_4(%arg0: i32) -> (i32, i32, i32) {
    %c0_i32 = arith.constant 0 : i32
    %c0_i32_0 = arith.constant 0 : i32
    %c0_i32_1 = arith.constant 0 : i32
    return %arg0, %c0_i32, %c0_i32_0 : i32, i32, i32
  }
}

</mosaic_0001>

<bundles_post_ra>
// kernel: tpu_custom_call.1
= control target key start
LH: loop header
LB: loop body
LE: loop exit
PB: predicated region body
PF: predicated region fallthrough
CT: control target
= control target key end

     0   :  { %v401_v2 = vmov 0.0|0.0   ;;  %vm402_vm0 = vmmov 0   ;;  %v403_v6 = vmov 0.0   ;;  %s485_s0 = inlined_call_operand.vmem [shape: f32[8,20], index: 0, kind: input, shape index: {}]   ;;  %s486_s1 = inlined_call_operand.vmem [shape: f32[20,64], index: 1, kind: input, shape index: {}]   ;;  %s487_s2 = inlined_call_operand.vmem [shape: f32[64,32], index: 2, kind: input, shape index: {}]   ;;  %s488_s3 = inlined_call_operand.vmem [shape: f32[4,128], index: 3, kind: input, shape index: {}]   ;;  %s489_s4 = inlined_call_operand.hbm [shape: f32[1,1,8], index: 4, kind: output, shape index: {}]  }
   0x1   :  { %v20_v0 = vld [vmem:[%s486_s1] sm:$0xff]  ;;  %v21_v1 = vld [vmem:[%s486_s1 + $0x8] sm:$0xff]  ;;  %352 = vmatprep.subr.bf16.mxu0 %v401_v2  ;;  %355 = vmatprep.subr.bf16.mxu1 %v401_v2  ;;  %v108_v8 = vld [vmem:[%s487_s2 + $0x10] sm:$0xff] }
   0x2   :  { %v353_v3 = vpack.c.bf16 %v21_v1, %v20_v0  ;;  %v106_v4 = vld [vmem:[%s487_s2] sm:$0xff]  ;;  %v107_v5 = vld [vmem:[%s487_s2 + $0x8] sm:$0xff]  ;;  %325 = vmatprep.mubr.msk.f32.mxu0 %vm402_vm0, %v403_v6  ;;  %v109_v9 = vld [vmem:[%s487_s2 + $0x18] sm:$0xff]  ;;  %344 = vmatprep.mubr.msk.f32.mxu1 %vm402_vm0, %v403_v6 }
   0x3   :  { %v356_v7 = vpack.c.bf16 %v107_v5, %v106_v4 }
   0x4   :  { %354 = vmatpush3.bf16.msra.mxu0 %v353_v3 }
   0x5   :  { %9 = vsyncpa [#allocation3], 0  ;;  %323 = vmatprep.subr.mxu0 %v403_v6  ;;  %v22_v10 = vld [vmem:[%s486_s1 + $0x10] sm:$0xf]  ;;  %vm31_vm1 = vcmask 1043456   ;;  %357 = vmatpush3.bf16.msra.mxu1 %v356_v7  ;;  %v359_v11 = vpack.c.bf16 %v109_v9, %v108_v8  ;;  %v18_v12 = vld [vmem:[%s485_s0] sm:$0xff]  ;;  %v23_v19 = vlaneseq }
   0x6   :  { %vm27_vm2 = vcmask 162816   ;;  %358 = vmatprep.subr.bf16.mxu1 %v401_v2  ;;  %v110_v13 = vld [vmem:[%s487_s2 + $0x20] sm:$0xff]  ;;  %v111_v14 = vld [vmem:[%s487_s2 + $0x28] sm:$0xff]  ;;  %v112_v16 = vld [vmem:[%s487_s2 + $0x30] sm:$0xff]  ;;  %vm118_vm3 = vcmask 523264   ;;  %v404_v28 = vmov 0  }
   0x7   :  { %v362_v15 = vpack.c.bf16 %v111_v14, %v110_v13  ;;  %v113_v17 = vld [vmem:[%s487_s2 + $0x38] sm:$0xff]  ;;  %v24_v20 = vshrl.u32 %v23_v19, 7  ;;  %v19_v22 = vld [vmem:[%s488_s3] sm:$0xf]  ;;  %372 = vset.pattern.permute.xlu0 %v404_v28  ;;  %vm200_vm4 = vcmask 261120   ;;  %s405_s2 = smov [#allocation2]  }
   0x8   :  { %324 = vmatpush3.msk.msra.mxu0 %vm31_vm1, %v22_v10  ;;  %v365_v18 = vpack.c.bf16 %v113_v17, %v112_v16  ;;  %195 = vperm.xlu0 %372, %v19_v22   ;;  %v197_v35 = vrot.slane %v19_v22, 2  ;;  %s290_s3 = sshll.u32 %s405_s2, 4  ;;  %vm282_vm5 = vcmask 57344   ;;  %s291_s3 = int_to_ptr.vmem [resolvable:$true] %s290_s3 }
   0x9   :  { %326 = vmatmul.mubr.msk.f32.vlgmr.msra.gmra.mrb[0].mxu0 %vm27_vm2, %v18_v12  ;;  %360 = vmatpush3.bf16.msra.mxu1 %v359_v11  ;;  %v25_v21 = vsub.s32 0, %v24_v20  ;;  %v116_v29 = vsub.s32 1, %v24_v20  ;;  %s377_s13 = scalar_lea.vmem %s291_s3, 16  ;;  %s381_s14 = scalar_lea.vmem %s291_s3, 32 }
   0xa   :  { %361 = vmatprep.subr.bf16.mxu1 %v401_v2  ;;  %347 = vmatprep.subr.mxu0 %v403_v6  ;;  %p378_p0 = scmp.ne.s32.totalorder %s291_s3, %s377_s13  ;;  %p382_p1 = scmp.lt.s32.totalorder %s291_s3, %s291_s3 }
   0xb   :  { %349 = vmatprep.mubr.msk.f32.mxu0 %vm402_vm0, %v403_v6  ;;  %v26_v23 = vrot.slane %v19_v22, %v25_v21  ;;  %v117_v30 = vrot.slane %v19_v22, %v116_v29  ;;  %p383_p2 = scmp.lt.s32.totalorder %s381_s14, %s377_s13 }
   0xd   :  { %363 = vmatpush3.bf16.msra.mxu1 %v362_v15  ;;  %p384_p3 = por %p383_p2, %p382_p1 }
   0xe   :  { %364 = vmatprep.subr.bf16.mxu1 %v401_v2 }
   0xf   :  { %p385_p4 = pnand %p384_p3, %p378_p0 }
  0x11   :  { %366 = vmatpush3.bf16.msra.mxu1 %v365_v18 }
  0x87   :  { %v196_v36 = vpop.permute.xlu0 %195 }
  0x88   :  { %v198_v37 = vrot.slane %v196_v36, 3 }
  0xdc   :  { %v101_v24 = vpop.f32.mrb[0].mxu0 }
  0xdd   :  { %v102_v25 = vadd.f32 %v101_v24, %v26_v23  ;;  %v327_v26 = vpop.f32.mrb[1].mxu0 }
  0xdf   :  { %v105_v27 = vmax.f32 %v102_v25, 0.0 }
  0xe1   :  { %345 = vmatmul.mubr.msk.f32.vlgmr.msra.gmra.mrb[0].mxu1 %vm118_vm3, %v105_v27 }
 0x1b4   :  { %v188_v31 = vpop.f32.mrb[0].mxu1 }
 0x1b5   :  { %v189_v32 = vadd.f32 %v188_v31, %v117_v30  ;;  %v346_v33 = vpop.f32.mrb[1].mxu1 }
 0x1b7   :  { %v192_v34 = vmax.f32 %v189_v32, 0.0 }
 0x1b9   :  { %348 = vmatpush3.xpose.msk.msra.mxu0 %vm200_vm4, %v192_v34 }
 0x1bc   :  { %350 = vmatmul.mubr.msk.f32.vlgmr.msra.gmra.mrb[2].mxu0 %vm200_vm4, %v197_v35 }
 0x28f   :  { %v272_v38 = vpop.f32.mrb[2].mxu0 }
 0x290   :  { %v273_v39 = vadd.f32 %v272_v38, %v198_v37  ;;  %v351_v40 = vpop.f32.mrb[3].mxu0 }
 0x292   :  { %v303_v41 = vmul.f32 -1.442695, %v273_v39 }
 0x294   :  { %373 = vpow2.f32 %v303_v41 }
 0x29e   :  { %v374_v42 = vpop.eup %373 }
 0x29f   :  { %v279_v43 = vadd.f32 1.0, %v374_v42 }
 0x2a1   :  { %375 = vrcp.f32 %v279_v43 }
 0x2ab   :  { %v376_v44 = vpop.eup %375 }
 0x2ac   :  { %283 = vst.msk [vmem:[#allocation2] sm:$0x1] %vm282_vm5, %v376_v44 }
 0x2ad   :  { %388 = shalt.err (!%p385_p4)
}
 0x2ae   :  { %s389_s17 = scalar_lea.hbm %s489_s4, 16 }
 0x2af   :  { %p390_p5 = scmp.ne.s32.totalorder %s489_s4, %s389_s17  ;;  %p393_p6 = scmp.lt.u32.totalorder %s389_s17, %s489_s4 }
 0x2b1   :  { %p395_p7 = pnand %p393_p6, %p390_p5 }
 0x2b3   :  { %398 = shalt.err (!%p395_p7)
}
 0x2b4   :  { %293 = dma.vmem_to_hbm [thread:$0]  %s291_s3, 16, %s489_s4, [#allocation3]  }
 0x2b5   :  { %399 = dma.done.wait [#allocation3], 16  }
 0x2b6   :  { %400 = vsyncadd [#allocation3], 4294967280 }
 0x2b7   :  { %297 = vsyncpa [#allocation3], 1 }

</bundles_post_ra>
